<compile_context>
chip_gen: v7x
topology: tpu7x:2x2x1
jax: 0.10.0
libtpu: 0.0.40
codegen_flags: <defaults>
</compile_context>

<pallas_src>
import functools
import math

import jax
import jax.numpy as jnp
from jax import lax
from jax.experimental import pallas as pl
from jax.experimental.pallas import tpu as pltpu


def _arc_margin_kernel(label_ref, x_ref, bw_ref, wnt_ref, out_ref, xn_ref, *,
                       cos_m, sin_m, th, mm, s, tile_c):
    """Fused backbone-linear + ArcMarginProduct for one (batch-tile, class-tile).

    label_ref: (TB, 1)  int32    class labels
    x_ref:     (TB, F)  bfloat16 flattened EEG input
    bw_ref:    (F,  D)  bfloat16 backbone stand-in weights (untiled)
    wnt_ref:   (D, TC)  bfloat16 pre-normalized, pre-transposed arc weights
    out_ref:   (TB, TC) float32  scaled logits
    xn_ref:    (TB, D)  bfloat16 VMEM scratch: cached normalized embedding
    """
    j = pl.program_id(1)

    # Backbone matmul + F.normalize(emb, dim=1) only once per batch tile; the class
    # ("arbitrary") axis reuses the cached bf16 x_n from VMEM scratch for all j.
    @pl.when(j == 0)
    def _():
        emb = jnp.dot(x_ref[...], bw_ref[...], preferred_element_type=jnp.float32)
        sq = jnp.sum(emb * emb, axis=-1, keepdims=True)
        xn_ref[...] = (emb * lax.rsqrt(jnp.maximum(sq, 1e-24))).astype(xn_ref.dtype)

    # cosine = x_n @ w_n.T with w_n pre-transposed in the wrapper -> MXU-native (K,N)
    # feed, bf16 operands, f32 accumulation.
    cosine = jnp.dot(xn_ref[...], wnt_ref[...], preferred_element_type=jnp.float32)

    # Arc-margin epilogue restricted to the label column (easy_margin=False).
    col = lax.broadcasted_iota(jnp.int32, cosine.shape, 1) + j * tile_c
    hit = col == label_ref[...]                                   # (TB, TC) bool
    cos_lab = jnp.sum(jnp.where(hit, cosine, 0.0), axis=-1, keepdims=True)  # (TB, 1)
    sine = jnp.sqrt(jnp.maximum(1.0 - cos_lab * cos_lab, 0.0))    # clamp: no NaN
    phi = cos_lab * cos_m - sine * sin_m
    phi = jnp.where(cos_lab > th, phi, cos_lab - mm)
    out_ref[...] = (jnp.where(hit, phi, cosine) * s).astype(out_ref.dtype)


def _pick_tile(dim, candidates):
    """Largest candidate tile that evenly divides dim; fall back to the full dim."""
    for t in candidates:
        if dim % t == 0:
            return t
    return dim


def _vmem_block_bytes(tb, tc, f_dim, d):
    """Double-buffered block footprint + persistent x_n scratch (bytes)."""
    dbl = 2 * (tb * f_dim * 2      # x_flat block (bf16)
               + f_dim * d * 2     # backbone_w block (bf16)
               + d * tc * 2        # w_n^T block (bf16)
               + tb * tc * 4       # output block (f32)
               + tb * 4)           # label block (int32)
    return dbl + tb * d * 2        # x_n scratch (bf16)


def arc_margin_head(x, label, backbone_w, arc_w, *, s=30.0, m=0.5):
    """ArcMarginHead.forward.

    x:          (B, C_in, H, W) NCHW-style EEG input.
    label:      (B,)            int class labels.
    backbone_w: (C_in*H*W, D)   stand-in linear backbone weights.
    arc_w:      (C, D)          ArcMarginProduct weight (out_features, in_features).
    """
    B = x.shape[0]
    x_flat = jnp.reshape(x, (B, -1)).astype(jnp.bfloat16)   # bf16 MXU operand
    F_dim = x_flat.shape[1]
    C, D = arc_w.shape
    assert backbone_w.shape == (F_dim, D)
    bw = backbone_w.astype(jnp.bfloat16)

    # F.normalize(weight) is batch-independent: hoist, store bf16, pre-transpose to
    # (D, C) so the kernel contraction is a plain (M,K)x(K,N) feed (no per-tile vxpose).
    w_f32 = arc_w.astype(jnp.float32)
    w_sq = jnp.sum(w_f32 * w_f32, axis=-1, keepdims=True)
    w_nt = (w_f32 * lax.rsqrt(jnp.maximum(w_sq, 1e-24))).T.astype(jnp.bfloat16)  # (D, C)

    label2d = label.reshape(B, 1).astype(jnp.int32)

    # Tile selection: big lane-dense class tiles (v6e/v7x MXU), >=2 batch grid points
    # when B allows (v7x megacore sharding of the "parallel" axis).
    tb = _pick_tile(B, (256, 128, 64, 32, 16, 8))
    if B // tb < 2 and tb >= 16:
        tb //= 2
    tc = _pick_tile(C, (512, 256, 128))

    # VMEM budget: ~0.7x of this generation's capacity (64 MiB fallback, i.e. v7x).
    try:
        info = pltpu.get_tpu_info()
        vmem_cap = int(getattr(info, "vmem_capacity_bytes", 0)) or 64 * 1024 * 1024
    except Exception:
        vmem_cap = 64 * 1024 * 1024
    budget = max(int(0.7 * vmem_cap), 32 * 1024 * 1024)
    while _vmem_block_bytes(tb, tc, F_dim, D) > budget and tb >= 16:
        tb //= 2
    while _vmem_block_bytes(tb, tc, F_dim, D) > budget and tc >= 256:
        tc //= 2

    grid = (B // tb, C // tc)

    kernel = functools.partial(
        _arc_margin_kernel,
        cos_m=math.cos(m),
        sin_m=math.sin(m),
        th=math.cos(math.pi - m),
        mm=math.sin(math.pi - m) * m,
        s=s,
        tile_c=tc,
    )

    return pl.pallas_call(
        kernel,
        out_shape=jax.ShapeDtypeStruct((B, C), jnp.float32),
        grid_spec=pltpu.PrefetchScalarGridSpec(
            num_scalar_prefetch=0,
            grid=grid,
            in_specs=[
                pl.BlockSpec((tb, 1), lambda i, j: (i, 0)),       # labels   (TB, 1)
                pl.BlockSpec((tb, F_dim), lambda i, j: (i, 0)),   # x_flat   (TB, F)
                pl.BlockSpec((F_dim, D), lambda i, j: (0, 0)),    # backbone (F, D)
                pl.BlockSpec((D, tc), lambda i, j: (0, j)),       # w_n^T    (D, TC)
            ],
            out_specs=pl.BlockSpec((tb, tc), lambda i, j: (i, j)),
            scratch_shapes=[pltpu.VMEM((tb, D), jnp.bfloat16)],   # cached x_n
        ),
        compiler_params=pltpu.CompilerParams(
            # j must be "arbitrary": x_n scratch is reused (carried) across class tiles.
            dimension_semantics=("parallel", "arbitrary"),
            vmem_limit_bytes=budget,
        ),
    )(label2d, x_flat, bw, w_nt)


def _reference(x, label, backbone_w, arc_w, *, s=30.0, m=0.5):
    """Pure-JAX reference of the same forward (f32 everywhere)."""
    B = x.shape[0]
    emb = jnp.reshape(x, (B, -1)).astype(jnp.float32) @ backbone_w
    x_n = emb / jnp.maximum(jnp.linalg.norm(emb, axis=-1, keepdims=True), 1e-12)
    w_n = arc_w / jnp.maximum(jnp.linalg.norm(arc_w, axis=-1, keepdims=True), 1e-12)
    cosine = x_n @ w_n.T
    sine = jnp.sqrt(jnp.maximum(1.0 - cosine * cosine, 0.0))
    phi = cosine * math.cos(m) - sine * math.sin(m)
    phi = jnp.where(cosine > math.cos(math.pi - m), phi,
                    cosine - math.sin(math.pi - m) * m)
    one_hot = jax.nn.one_hot(label, arc_w.shape[0], dtype=cosine.dtype)
    return (one_hot * phi + (1.0 - one_hot) * cosine) * s


if __name__ == "__main__":
    key = jax.random.PRNGKey(0)
    k_x, k_bw, k_aw, k_lbl = jax.random.split(key, 4)

    B = 8                  # batch
    C_in, H, W = 1, 8, 32  # small EEG-like NCHW input
    in_features = 128      # embedding dim D
    out_features = 128     # number of subject classes C

    # Inputs
    x = jax.random.normal(k_x, (B, C_in, H, W), dtype=jnp.float32)
    label = jax.random.randint(k_lbl, (B,), 0, out_features, dtype=jnp.int32)

    # Deterministic parameters
    flat_dim = C_in * H * W
    backbone_w = 0.05 * jax.random.normal(
        k_bw, (flat_dim, in_features), dtype=jnp.float32)

    # nn.init.xavier_uniform_ for (out_features, in_features)
    bound = math.sqrt(6.0 / (in_features + out_features))
    arc_w = jax.random.uniform(
        k_aw, (out_features, in_features), dtype=jnp.float32,
        minval=-bound, maxval=bound)

    out = arc_margin_head(x, label, backbone_w, arc_w, s=30.0, m=0.5)
    out = jax.block_until_ready(out)

    assert out.shape == (B, out_features) and out.dtype == jnp.float32
    assert bool(jnp.all(jnp.isfinite(out)))

    # Loose tolerance: backbone + cosine matmuls use bf16 operands (f32 accumulate).
    ref = _reference(x, label, backbone_w, arc_w, s=30.0, m=0.5)
    assert bool(jnp.allclose(out, ref, atol=1.0, rtol=0.0))

    print("KERNEL_OK")
</pallas_src>

<mosaic_0001>
module attributes {stable_mosaic.version = 11 : i64} {
  func.func @_arc_margin_kernel(%arg0: i32, %arg1: i32, %arg2: memref<8x1xi32, #tpu.memory_space<vmem>>, %arg3: memref<8x256xbf16, #tpu.memory_space<vmem>>, %arg4: memref<256x128xbf16, #tpu.memory_space<vmem>>, %arg5: memref<128x128xbf16, #tpu.memory_space<vmem>>, %arg6: memref<8x128xf32, #tpu.memory_space<vmem>>, %arg7: memref<8x128xbf16, #tpu.memory_space<vmem>>) attributes {dimension_semantics = [#tpu.dimension_semantics<parallel>, #tpu.dimension_semantics<arbitrary>], iteration_bounds = array<i64: 1, 1>, scalar_prefetch = 0 : i64, scratch_operands = 1 : i64, tpu.core_type = #tpu.core_type<tc>, window_params = [{transform_indices = @transform_0, window_bounds = array<i64: 8, 1>}, {transform_indices = @transform_1, window_bounds = array<i64: 8, 256>}, {pipeline_mode = #tpu.pipeline_mode<synchronous>, transform_indices = @transform_2, window_bounds = array<i64: 256, 128>}, {transform_indices = @transform_3, window_bounds = array<i64: 128, 128>}, {transform_indices = @transform_4, window_bounds = array<i64: 8, 128>}]} {
    %c0_i32 = arith.constant 0 : i32
    %0 = arith.cmpi eq, %arg1, %c0_i32 : i32
    %1 = arith.extui %0 : i1 to i32
    %c0_i32_0 = arith.constant 0 : i32
    %2 = arith.cmpi ne, %1, %c0_i32_0 : i32
    scf.if %2 {
      %c0_17 = arith.constant 0 : index
      %c0_18 = arith.constant 0 : index
      %39 = vector.load %arg3[%c0_17, %c0_18] : memref<8x256xbf16, #tpu.memory_space<vmem>>, vector<8x256xbf16>
      %c0_19 = arith.constant 0 : index
      %c0_20 = arith.constant 0 : index
      %40 = vector.load %arg4[%c0_19, %c0_20] : memref<256x128xbf16, #tpu.memory_space<vmem>>, vector<256x128xbf16>
      %cst_21 = arith.constant dense<0.000000e+00> : vector<8x128xf32>
      %41 = tpu.matmul %39, %40, %cst_21 {dimension_numbers = #tpu.dot_dimension_numbers<[1], [0], [0], [1], [0, 0, 1, 1], [], []>} : vector<8x256xbf16>, vector<256x128xbf16>, vector<8x128xf32> -> vector<8x128xf32>
      %42 = arith.mulf %41, %41 : vector<8x128xf32>
      %cst_22 = arith.constant dense<0.000000e+00> : vector<8xf32>
      %43 = vector.multi_reduction <add>, %42, %cst_22 [1] : vector<8x128xf32> to vector<8xf32>
      %44 = vector.shape_cast %43 : vector<8xf32> to vector<8x1xf32>
      %cst_23 = arith.constant 1.000000e-24 : f32
      %45 = vector.broadcast %cst_23 : f32 to vector<8x1xf32>
      %46 = arith.maximumf %44, %45 : vector<8x1xf32>
      %47 = math.rsqrt %46 : vector<8x1xf32>
      %48 = vector.broadcast %47 : vector<8x1xf32> to vector<8x128xf32>
      %49 = arith.mulf %41, %48 : vector<8x128xf32>
      %50 = arith.truncf %49 : vector<8x128xf32> to vector<8x128xbf16>
      %c0_24 = arith.constant 0 : index
      %c0_25 = arith.constant 0 : index
      %51 = vector.load %arg7[%c0_24, %c0_25] : memref<8x128xbf16, #tpu.memory_space<vmem>>, vector<8x128xbf16>
      tpu.vector_store %arg7[%c0_24, %c0_25], %50 {strides = array<i32>} : memref<8x128xbf16, #tpu.memory_space<vmem>>, vector<8x128xbf16>,
    } else {
    }
    %c0 = arith.constant 0 : index
    %c0_1 = arith.constant 0 : index
    %3 = vector.load %arg7[%c0, %c0_1] : memref<8x128xbf16, #tpu.memory_space<vmem>>, vector<8x128xbf16>
    %c0_2 = arith.constant 0 : index
    %c0_3 = arith.constant 0 : index
    %4 = vector.load %arg5[%c0_2, %c0_3] : memref<128x128xbf16, #tpu.memory_space<vmem>>, vector<128x128xbf16>
    %cst = arith.constant dense<0.000000e+00> : vector<8x128xf32>
    %5 = tpu.matmul %3, %4, %cst {dimension_numbers = #tpu.dot_dimension_numbers<[1], [0], [0], [1], [0, 0, 1, 1], [], []>} : vector<8x128xbf16>, vector<128x128xbf16>, vector<8x128xf32> -> vector<8x128xf32>
    %6 = tpu.iota {dimensions = array<i32: 1>} : vector<8x128xi32>
    %c128_i32 = arith.constant 128 : i32
    %7 = arith.muli %arg1, %c128_i32 : i32
    %8 = vector.broadcast %7 : i32 to vector<8x128xi32>
    %9 = arith.addi %6, %8 : vector<8x128xi32>
    %c0_4 = arith.constant 0 : index
    %c0_5 = arith.constant 0 : index
    %10 = vector.load %arg2[%c0_4, %c0_5] : memref<8x1xi32, #tpu.memory_space<vmem>>, vector<8x1xi32>
    %11 = vector.broadcast %10 : vector<8x1xi32> to vector<8x128xi32>
    %12 = arith.cmpi eq, %9, %11 : vector<8x128xi32>
    %cst_6 = arith.constant 0.000000e+00 : f32
    %13 = vector.broadcast %cst_6 : f32 to vector<8x128xf32>
    %14 = arith.select %12, %5, %13 : vector<8x128xi1>, vector<8x128xf32>
    %cst_7 = arith.constant dense<0.000000e+00> : vector<8xf32>
    %15 = vector.multi_reduction <add>, %14, %cst_7 [1] : vector<8x128xf32> to vector<8xf32>
    %16 = vector.shape_cast %15 : vector<8xf32> to vector<8x1xf32>
    %17 = arith.mulf %16, %16 : vector<8x1xf32>
    %cst_8 = arith.constant 1.000000e+00 : f32
    %18 = vector.broadcast %cst_8 : f32 to vector<8x1xf32>
    %19 = arith.subf %18, %17 : vector<8x1xf32>
    %cst_9 = arith.constant 0.000000e+00 : f32
    %20 = vector.broadcast %cst_9 : f32 to vector<8x1xf32>
    %21 = arith.maximumf %19, %20 : vector<8x1xf32>
    %22 = math.sqrt %21 : vector<8x1xf32>
    %cst_10 = arith.constant 0.87758255 : f32
    %23 = vector.broadcast %cst_10 : f32 to vector<8x1xf32>
    %24 = arith.mulf %16, %23 : vector<8x1xf32>
    %cst_11 = arith.constant 0.47942555 : f32
    %25 = vector.broadcast %cst_11 : f32 to vector<8x1xf32>
    %26 = arith.mulf %22, %25 : vector<8x1xf32>
    %27 = arith.subf %24, %26 : vector<8x1xf32>
    %cst_12 = arith.constant -0.87758255 : f32
    %28 = vector.broadcast %cst_12 : f32 to vector<8x1xf32>
    %29 = arith.cmpf ogt, %16, %28 : vector<8x1xf32>
    %cst_13 = arith.constant 0.239712775 : f32
    %30 = vector.broadcast %cst_13 : f32 to vector<8x1xf32>
    %31 = arith.subf %16, %30 : vector<8x1xf32>
    %32 = arith.select %29, %27, %31 : vector<8x1xi1>, vector<8x1xf32>
    %33 = vector.shape_cast %32 : vector<8x1xf32> to vector<8x1xf32>
    %34 = vector.broadcast %33 : vector<8x1xf32> to vector<8x128xf32>
    %35 = arith.select %12, %34, %5 : vector<8x128xi1>, vector<8x128xf32>
    %cst_14 = arith.constant 3.000000e+01 : f32
    %36 = vector.broadcast %cst_14 : f32 to vector<8x128xf32>
    %37 = arith.mulf %35, %36 : vector<8x128xf32>
    %c0_15 = arith.constant 0 : index
    %c0_16 = arith.constant 0 : index
    %38 = vector.load %arg6[%c0_15, %c0_16] : memref<8x128xf32, #tpu.memory_space<vmem>>, vector<8x128xf32>
    tpu.vector_store %arg6[%c0_15, %c0_16], %37 {strides = array<i32>} : memref<8x128xf32, #tpu.memory_space<vmem>>, vector<8x128xf32>,
    return
  }
  func.func @transform_0(%arg0: i32, %arg1: i32) -> (i32, i32) {
    %c0_i32 = arith.constant 0 : i32
    %c0_i32_0 = arith.constant 0 : i32
    return %arg0, %c0_i32 : i32, i32
  }
  func.func @transform_1(%arg0: i32, %arg1: i32) -> (i32, i32) {
    %c0_i32 = arith.constant 0 : i32
    %c0_i32_0 = arith.constant 0 : i32
    return %arg0, %c0_i32 : i32, i32
  }
  func.func @transform_2(%arg0: i32, %arg1: i32) -> (i32, i32) {
    %c0_i32 = arith.constant 0 : i32
    %c0_i32_0 = arith.constant 0 : i32
    %c0_i32_1 = arith.constant 0 : i32
    return %c0_i32, %c0_i32_0 : i32, i32
  }
  func.func @transform_3(%arg0: i32, %arg1: i32) -> (i32, i32) {
    %c0_i32 = arith.constant 0 : i32
    %c0_i32_0 = arith.constant 0 : i32
    return %c0_i32, %arg1 : i32, i32
  }
  func.func @transform_4(%arg0: i32, %arg1: i32) -> (i32, i32) {
    %c0_i32 = arith.constant 0 : i32
    return %arg0, %arg1 : i32, i32
  }
}

</mosaic_0001>

<bundles_post_ra>
// kernel: tpu_custom_call.1
= control target key start
LH: loop header
LB: loop body
LE: loop exit
PB: predicated region body
PF: predicated region fallthrough
CT: control target
= control target key end

     0   :  { %9 = vsyncpa [#allocation4], 0  ;;  %s654_s0 = inlined_call_operand.vmem [shape: s32[8,1], index: 0, kind: input, shape index: {}]   ;;  %s655_s1 = inlined_call_operand.vmem [shape: bf16[8,256], index: 1, kind: input, shape index: {}]   ;;  %s656_s2 = inlined_call_operand.hbm [shape: bf16[256,128], index: 2, kind: input, shape index: {}]   ;;  %s657_s3 = inlined_call_operand.hbm [shape: bf16[128,128], index: 3, kind: input, shape index: {}]   ;;  %s658_s4 = inlined_call_operand.hbm [shape: f32[8,128], index: 4, kind: output, shape index: {}]  }
   0x1   :  { %10 = vsyncpa [#allocation7], 0 }
   0x2   :  { %11 = vsyncpa [#allocation5], 0  ;;  %s577_s15 = smov [#allocation3]   ;;  %s505_s19 = scalar_lea.hbm %s656_s2, 2048 }
   0x3   :  { %s21_s16 = sshll.u32 %s577_s15, 4  ;;  %p506_p0 = scmp.ne.s32.totalorder %s656_s2, %s505_s19  ;;  %s22_s16 = int_to_ptr.vmem [resolvable:$true] %s21_s16 }
   0x4   :  { %p509_p1 = scmp.lt.u32.totalorder %s505_s19, %s656_s2 }
   0x6   :  { %p511_p2 = pnand %p509_p1, %p506_p0 }
   0x8   :  { %514 = shalt.err (!%p511_p2)
}
   0x9   :  { %s515_s24 = scalar_lea.vmem %s22_s16, 2048  ;;  %p520_p4 = scmp.lt.s32.totalorder %s22_s16, %s22_s16 }
   0xa   :  { %p516_p3 = scmp.ne.s32.totalorder %s22_s16, %s515_s24  ;;  %p521_p5 = scmp.lt.s32.totalorder %s515_s24, %s515_s24 }
   0xc   :  { %p522_p6 = por %p521_p5, %p520_p4 }
   0xe   :  { %p523_p7 = pnand %p522_p6, %p516_p3 }
  0x10   :  { %526 = shalt.err (!%p523_p7)
}
  0x11   :  { %s578_s25 = smov 64   ;;  %s579_s26 = smov 4  }
  0x12   :  { %27 = dma.hbm_to_vmem [thread:$0]  %s656_s2, 2048, %s22_s16, [#allocation4], %s578_s25, %s578_s25, %s579_s26  }
  0x13   :  { %s580_s29 = smov [#allocation6]   ;;  %s527_s7 = scalar_lea.hbm %s657_s3, 1024 }
  0x14   :  { %s33_s30 = sshll.u32 %s580_s29, 4  ;;  %p528_p8 = scmp.ne.s32.totalorder %s657_s3, %s527_s7  ;;  %s34_s30 = int_to_ptr.vmem [resolvable:$true] %s33_s30 }
  0x15   :  { %p531_p9 = scmp.lt.u32.totalorder %s527_s7, %s657_s3 }
  0x17   :  { %p533_p10 = pnand %p531_p9, %p528_p8 }
  0x19   :  { %536 = shalt.err (!%p533_p10)
}
  0x1a   :  { %s537_s12 = scalar_lea.vmem %s34_s30, 1024  ;;  %p542_p12 = scmp.lt.s32.totalorder %s34_s30, %s34_s30 }
  0x1b   :  { %p538_p11 = scmp.ne.s32.totalorder %s34_s30, %s537_s12  ;;  %p543_p13 = scmp.lt.s32.totalorder %s537_s12, %s537_s12 }
  0x1d   :  { %p544_p0 = por %p543_p13, %p542_p12 }
  0x1f   :  { %p545_p1 = pnand %p544_p0, %p538_p11 }
  0x21   :  { %548 = shalt.err (!%p545_p1)
}
  0x22   :  { %39 = dma.hbm_to_vmem [thread:$0]  %s657_s3, 1024, %s34_s30, [#allocation7], %s578_s25, %s578_s25, %s579_s26  }
  0x23   :  { %571 = dma.done.wait [#allocation4], 2048  }
  0x24   :  { %572 = vsyncadd [#allocation4], 4294965248 }
  0x25   :  { %573 = dma.done.wait [#allocation7], 1024  }
  0x26   :  { %574 = vsyncadd [#allocation7], 4294966272  ;;  %v475_v0 = vld [vmem:[#allocation3 + $0x40] sm:$0xff]   ;;  %v477_v2 = vld [vmem:[#allocation3 + $0x48] sm:$0xff]   ;;  %v581_v20 = vmov 0.0   ;;  %vm582_vm0 = vmmov 0   ;;  %v340_v42 = vlaneseq }
  0x27   :  { %v476_v1 = vld [vmem:[#allocation3] sm:$0xff]   ;;  %415 = vmatprep.subr.bf16.mxu0 %v475_v0  ;;  %v478_v3 = vld [vmem:[#allocation3 + $0x8] sm:$0xff]   ;;  %v479_v4 = vld [vmem:[#allocation3 + $0x50] sm:$0xff]   ;;  %446 = vmatprep.subr.bf16.mxu1 %v581_v20  ;;  %v583_v35 = vmov 0  }
  0x28   :  { %416 = vmatpush3.bf16.msra.mxu0 %v476_v1  ;;  %v480_v5 = vld [vmem:[#allocation3 + $0x10] sm:$0xff]   ;;  %v481_v6 = vld [vmem:[#allocation3 + $0x58] sm:$0xff]   ;;  %v483_v8 = vld [vmem:[#allocation3 + $0x60] sm:$0xff]   ;;  %462 = vmatprep.mubr.msk.bf16.mxu1 %vm582_vm0, %v581_v20  ;;  %v341_v43 = vand.u32 127, %v340_v42 }
  0x29   :  { %417 = vmatprep.subr.bf16.mxu0 %v477_v2  ;;  %v482_v7 = vld [vmem:[#allocation3 + $0x18] sm:$0xff]   ;;  %v484_v9 = vld [vmem:[#allocation3 + $0x20] sm:$0xff]   ;;  %v485_v10 = vld [vmem:[#allocation3 + $0x68] sm:$0xff]   ;;  %474 = vset.pattern.permute.xlu0 %v583_v35 }
  0x2a   :  { %v51_v11 = vld [vmem:[%s655_s1] sm:$0xff]  ;;  %v489_v16 = vld [vmem:[#allocation3 + $0x78] sm:$0xff]   ;;  %v493_v19 = vld [vmem:[#allocation6] sm:$0xff]  }
  0x2b   :  { %v486_v12 = vld [vmem:[#allocation3 + $0x28] sm:$0xff]   ;;  %v389_v13 = vcombine.high %v51_v11, %v51_v11  ;;  %v487_v14 = vld [vmem:[#allocation3 + $0x70] sm:$0xff]   ;;  %v490_v17 = vld [vmem:[#allocation3 + $0x38] sm:$0xff]   ;;  %v388_v18 = vcombine.low %v51_v11, %v51_v11  ;;  %447 = vmatpush3.bf16.msra.mxu1 %v493_v19 }
  0x2c   :  { %418 = vmatpush3.bf16.msra.mxu0 %v478_v3  ;;  %v488_v15 = vld [vmem:[#allocation3 + $0x30] sm:$0xff]   ;;  %v494_v21 = vld [vmem:[#allocation6 + $0x8] sm:$0xff]   ;;  %448 = vmatprep.subr.bf16.mxu1 %v581_v20  ;;  %v496_v29 = vld [vmem:[#allocation6 + $0x18] sm:$0xff]  }
  0x2d   :  { %419 = vmatprep.subr.bf16.mxu0 %v479_v4  ;;  %219 = vmatprep.mubr.bf16.mxu0 %v389_v13  ;;  %v495_v28 = vld [vmem:[#allocation6 + $0x10] sm:$0xff]   ;;  %v497_v30 = vld [vmem:[#allocation6 + $0x20] sm:$0xff]   ;;  %v498_v31 = vld [vmem:[#allocation6 + $0x28] sm:$0xff]  }
  0x2e   :  { %v499_v32 = vld [vmem:[#allocation6 + $0x30] sm:$0xff]   ;;  %v500_v33 = vld [vmem:[#allocation6 + $0x38] sm:$0xff]  }
  0x2f   :  { %449 = vmatpush3.bf16.msra.mxu1 %v494_v21  ;;  %v345_v34 = vld [vmem:[%s654_s0] sm:$0xff]  ;;  %s584_s0 = smov [#allocation8]  }
  0x30   :  { %420 = vmatpush3.bf16.msra.mxu0 %v480_v5  ;;  %450 = vmatprep.subr.bf16.mxu1 %v581_v20  ;;  %s378_s16 = sshll.u32 %s584_s0, 4  ;;  %s379_s16 = int_to_ptr.vmem [resolvable:$true] %s378_s16 }
  0x31   :  { %421 = vmatprep.subr.bf16.mxu0 %v481_v6  ;;  %s549_s17 = scalar_lea.vmem %s379_s16, 128  ;;  %p554_p3 = scmp.lt.s32.totalorder %s379_s16, %s379_s16 }
  0x32   :  { %p550_p2 = scmp.ne.s32.totalorder %s379_s16, %s549_s17  ;;  %p555_p4 = scmp.lt.s32.totalorder %s549_s17, %s549_s17 }
  0x33   :  { %451 = vmatpush3.bf16.msra.mxu1 %v495_v28 }
  0x34   :  { %422 = vmatpush3.bf16.msra.mxu0 %v482_v7  ;;  %452 = vmatprep.subr.bf16.mxu1 %v581_v20  ;;  %p556_p5 = por %p555_p4, %p554_p3 }
  0x35   :  { %423 = vmatprep.subr.bf16.mxu0 %v483_v8 }
  0x36   :  { %p557_p6 = pnand %p556_p5, %p550_p2 }
  0x37   :  { %453 = vmatpush3.bf16.msra.mxu1 %v496_v29 }
  0x38   :  { %424 = vmatpush3.bf16.msra.mxu0 %v484_v9  ;;  %454 = vmatprep.subr.bf16.mxu1 %v581_v20 }
  0x39   :  { %425 = vmatprep.subr.bf16.mxu0 %v485_v10 }
  0x3b   :  { %455 = vmatpush3.bf16.msra.mxu1 %v497_v30 }
  0x3c   :  { %426 = vmatpush3.bf16.msra.mxu0 %v486_v12  ;;  %456 = vmatprep.subr.bf16.mxu1 %v581_v20 }
  0x3d   :  { %427 = vmatprep.subr.bf16.mxu0 %v487_v14 }
  0x3f   :  { %457 = vmatpush3.bf16.msra.mxu1 %v498_v31 }
  0x40   :  { %428 = vmatpush3.bf16.msra.mxu0 %v488_v15  ;;  %458 = vmatprep.subr.bf16.mxu1 %v581_v20 }
  0x41   :  { %429 = vmatprep.subr.bf16.mxu0 %v489_v16 }
  0x43   :  { %459 = vmatpush3.bf16.msra.mxu1 %v499_v32 }
  0x44   :  { %430 = vmatpush3.bf16.msra.mxu0 %v490_v17  ;;  %460 = vmatprep.subr.bf16.mxu1 %v581_v20 }
  0x47   :  { %220 = vmatmul.mubr.bf16.vlgmr.msra.gmra.mrb[0].mxu0 %v388_v18  ;;  %461 = vmatpush3.bf16.msra.mxu1 %v500_v33 }
 0x11a   :  { %v431_v22 = vpop.f32.mrb[0].mxu0 }
 0x11b   :  { %v432_v23 = vpop.f32.mrb[1].mxu0 }
 0x11c   :  { %v433_v24 = vadd.f32 %v432_v23, %v431_v22  ;;  %v434_v25 = vpop.f32.mrb[2].mxu0 }
 0x11d   :  { %v435_v26 = vpop.f32.mrb[3].mxu0 }
 0x11e   :  { %v227_v27 = vmul.f32 %v433_v24, %v433_v24 }
 0x120   :  { %228 = vadd.xlane.f32.xlu0 %v227_v27 }
 0x136   :  { %347 = vperm.xlu0 %474, %v345_v34  }
 0x1ad   :  { %v229_v36 = vpop.xlane.xlu0 %228 }
 0x1ae   :  { %v230_v37 = vmax.f32 %v229_v36, 1e-24 }
 0x1b0   :  { %501 = vrsqrt.f32 %v230_v37 }
 0x1b5   :  { %v348_v44 = vpop.permute.xlu0 %347 }
 0x1b6   :  { %vm349_vm1 = vcmp.eq.s32.totalorder %v341_v43, %v348_v44 }
 0x1ba   :  { %v502_v38 = vpop.eup %501 }
 0x1bb   :  { %v232_v39 = vmul.f32 %v502_v38, %v433_v24 }
 0x1bd   :  { %v233_v40 = vpack.c.bf16 %v232_v39, %v232_v39 }
 0x1bf   :  { %234 = vst [vmem:[#allocation2] sm:$0xf] %v233_v40 }
 0x1c6   :  { %v235_v41 = vld [vmem:[#allocation2] sm:$0xf] }
 0x1c7   :  { %463 = vmatmul.mubr.bf16.vlgmr.msra.gmra.mrb[0].mxu1 %v235_v41 }
 0x29a   :  { %v334_v45 = vpop.f32.mrb[0].mxu1 }
 0x29b   :  { %v464_v46 = vpop.f32.mrb[1].mxu1  ;;  %v350_v47 = vsel %vm349_vm1, %v334_v45, 0.0 }
 0x29c   :  { %v337_v48 = vpop.f32.mrb[2].mxu1  ;;  %351 = vadd.xlane.f32.xlu1 %v350_v47 }
 0x29d   :  { %v465_v49 = vpop.f32.mrb[3].mxu1 }
 0x329   :  { %v352_v50 = vpop.xlane.xlu1 %351 }
 0x32a   :  { %v353_v51 = vmul.f32 %v352_v50, %v352_v50  ;;  %v363_v59 = vmul.f32 0.87758255, %v352_v50  ;;  %v414_v62 = vadd.f32 -0.23971277, %v352_v50  ;;  %vm366_vm4 = vcmp.gt.f32.partialorder %v352_v50, -0.87758255 }
 0x32c   :  { %v354_v52 = vsub.f32 1.0, %v353_v51 }
 0x32e   :  { %v355_v53 = vmax.f32 %v354_v52, 0.0 }
 0x330   :  { %503 = vrsqrt.f32 %v355_v53  ;;  %vm358_vm2 = vcmp.eq.f32.partialorder %v355_v53, inf  ;;  %v361_v56 = vand.u32 2147483648, %v355_v53  ;;  %vm360_vm3 = vcmp.eq.f32.partialorder %v355_v53, 0.0 }
 0x33a   :  { %v504_v54 = vpop.eup %503 }
 0x33b   :  { %v357_v55 = vmul.f32 %v504_v54, %v355_v53 }
 0x33d   :  { %v359_v57 = vsel %vm358_vm2, %v355_v53, %v357_v55 }
 0x33e   :  { %v362_v58 = vsel %vm360_vm3, %v361_v56, %v359_v57 }
 0x33f   :  { %v364_v60 = vmul.f32 0.47942555, %v362_v58 }
 0x341   :  { %v365_v61 = vsub.f32 %v363_v59, %v364_v60 }
 0x343   :  { %v368_v63 = vsel %vm366_vm4, %v365_v61, %v414_v62 }
 0x344   :  { %v369_v0 = vsel %vm349_vm1, %v368_v63, %v334_v45 }
 0x345   :  { %v370_v1 = vmul.f32 30.0, %v369_v0 }
 0x347   :  { %371 = vst [vmem:[#allocation8] sm:$0xff] %v370_v1 }
 0x348   :  { %560 = shalt.err (!%p557_p6)
}
 0x349   :  { %s561_s20 = scalar_lea.hbm %s658_s4, 128 }
 0x34a   :  { %p562_p7 = scmp.ne.s32.totalorder %s658_s4, %s561_s20  ;;  %p565_p8 = scmp.lt.u32.totalorder %s561_s20, %s658_s4 }
 0x34c   :  { %p567_p9 = pnand %p565_p8, %p562_p7 }
 0x34e   :  { %570 = shalt.err (!%p567_p9)
}
 0x34f   :  { %381 = dma.vmem_to_hbm [thread:$0]  %s379_s16, 128, %s658_s4, [#allocation5]  }
 0x350   :  { %575 = dma.done.wait [#allocation5], 128  }
 0x351   :  { %576 = vsyncadd [#allocation5], 4294967168 }
 0x352   :  { %385 = vsyncpa [#allocation4], 1 }
 0x353   :  { %386 = vsyncpa [#allocation7], 1 }
 0x354   :  { %387 = vsyncpa [#allocation5], 1 }

</bundles_post_ra>
